<compile_context>
chip_gen: v7x
topology: tpu7x:2x2x1
jax: 0.10.0
libtpu: 0.0.40
codegen_flags: <defaults>
</compile_context>

<pallas_src>
import functools

import jax
import jax.numpy as jnp
from jax.experimental import pallas as pl
from jax.experimental.pallas import tpu as pltpu

LANES = 128


def _round_up(x, m):
    return (x + m - 1) // m * m


def _apply_activation(h, activation):
    if activation == "relu":
        return jnp.maximum(h, 0.0)
    elif activation == "sigmoid":
        return jax.nn.sigmoid(h)
    elif activation == "tanh":
        return jnp.tanh(h)
    else:
        raise ValueError(f"Unsupported activation: {activation}")


def mlp_kernel(*refs, activation, num_linear, act_dtype):
    # refs = (x_ref, w1, b1, w2, b2, ..., wL, bL, out_ref)
    x_ref = refs[0]
    out_ref = refs[-1]
    param_refs = refs[1:-1]

    # In-kernel f32 -> bf16 cast (free on the VPU; avoids a wrapper-side HBM pass over x).
    h = x_ref[...].astype(jnp.bfloat16)
    for li in range(num_linear):
        w_ref = param_refs[2 * li]      # bf16 (in_pad, out_pad), VMEM-resident
        b_ref = param_refs[2 * li + 1]  # f32  (1, out_pad)
        # MXU: bf16 x bf16 -> f32 accumulation; bias add stays f32 on the VPU.
        acc = jnp.dot(h, w_ref[...], preferred_element_type=jnp.float32)
        acc = acc + b_ref[...]
        if li < num_linear - 1:  # activation after every layer except the last
            act = _apply_activation(acc.astype(act_dtype), activation)
            h = act.astype(jnp.bfloat16)  # back to bf16 for the next MXU pass
        else:
            h = acc
    out_ref[...] = h.astype(out_ref.dtype)  # bf16 writeback -> half the output HBM stream


def init_params(key, input_size, num_layers, num_nodes):
    """Deterministic synthetic f32 params mirroring NeuralNet.__init__ layer shapes."""
    dims = [input_size] + [num_nodes] * num_layers + [10]
    params = []
    for i in range(len(dims) - 1):
        fan_in, fan_out = dims[i], dims[i + 1]
        key, kw, kb = jax.random.split(key, 3)
        bound = 1.0 / jnp.sqrt(fan_in)
        # stored as (in, out) so the kernel computes x @ W (PyTorch stores (out, in))
        w = jax.random.uniform(kw, (fan_in, fan_out), jnp.float32, -bound, bound)
        b = jax.random.uniform(kb, (1, fan_out), jnp.float32, -bound, bound)
        params += [w, b]
    return params


def prepare_params(params_f32):
    """Zero-pad feature dims to multiples of 128 lanes; weights -> bf16, biases stay f32.

    Padding is numerically exact: padded weight rows/cols are zero, so whatever the padded
    activation columns become (e.g. sigmoid(0)=0.5) they are multiplied by zero rows of the
    next layer and contribute nothing.
    """
    num_linear = len(params_f32) // 2
    prepped = []
    for li in range(num_linear):
        w = params_f32[2 * li]
        b = params_f32[2 * li + 1].reshape(1, -1)
        in_d, out_d = w.shape
        in_pad = in_d if li == 0 else _round_up(in_d, LANES)
        out_pad = _round_up(out_d, LANES)
        w_p = jnp.zeros((in_pad, out_pad), jnp.float32).at[:in_d, :out_d].set(w)
        b_p = jnp.zeros((1, out_pad), jnp.float32).at[:, :out_d].set(b)
        prepped += [w_p.astype(jnp.bfloat16), b_p]
    return tuple(prepped)


def use_bf16_activation(activation):
    """bf16 EUP activations on v6e/v7x only (v5 has no bf16 EUP/VPU); relu stays exact f32."""
    if activation not in ("sigmoid", "tanh"):
        return False
    kind = jax.devices()[0].device_kind.lower()
    return any(tag in kind for tag in ("v6", "v7", "7x"))


@functools.partial(
    jax.jit, static_argnames=("activation", "out_dim", "block_batch", "act_in_bf16")
)
def neural_net_forward(x, params, *, activation, out_dim, block_batch=2048, act_in_bf16=False):
    params = tuple(params)
    num_linear = len(params) // 2
    batch, in_features = x.shape
    out_pad = params[-1].shape[-1]

    # --- batch tiling --------------------------------------------------------
    #  * tile rows are a multiple of 16 (bf16 sublane packing)
    #  * >=2 grid steps whenever the batch allows -> v7x megacore sharding
    #  * padding limited to the tail of the last tile (garbage rows sliced off)
    b16 = _round_up(batch, 16)
    n_steps = max(2, pl.cdiv(b16, block_batch))
    tb = _round_up(pl.cdiv(b16, n_steps), 16)
    grid_n = pl.cdiv(batch, tb)
    padded_batch = grid_n * tb
    grid = (grid_n,)

    # x streams f32 and unpadded from HBM (partial last tile handled by Pallas);
    # weights & biases always map to block (0, 0) so they stay VMEM-resident.
    in_specs = [pl.BlockSpec((tb, in_features), lambda i: (i, 0))]
    for p in params:
        in_specs.append(pl.BlockSpec(p.shape, lambda i: (0, 0)))
    # Output allocated at padded_batch rows so every store is a full, unmasked tile.
    out_specs = pl.BlockSpec((tb, out_pad), lambda i: (i, 0))

    flops = 2 * padded_batch * sum(
        params[2 * li].shape[0] * params[2 * li].shape[1] for li in range(num_linear)
    )
    transcendentals = 0
    if activation in ("sigmoid", "tanh"):
        transcendentals = padded_batch * sum(
            params[2 * li].shape[1] for li in range(num_linear - 1)
        )
    bytes_accessed = (
        x.size * x.dtype.itemsize
        + padded_batch * out_pad * 2  # bf16 writeback
        + sum(p.size * p.dtype.itemsize for p in params)
    )

    kernel = functools.partial(
        mlp_kernel,
        activation=activation,
        num_linear=num_linear,
        act_dtype=jnp.bfloat16 if act_in_bf16 else jnp.float32,
    )
    out = pl.pallas_call(
        kernel,
        out_shape=jax.ShapeDtypeStruct((padded_batch, out_pad), jnp.bfloat16),
        grid=grid,
        in_specs=in_specs,
        out_specs=out_specs,
        compiler_params=pltpu.CompilerParams(
            # Batch tiles are independent -> shard across the 2 TensorCores on v7x.
            dimension_semantics=("parallel",),
        ),
        cost_estimate=pl.CostEstimate(
            flops=flops, transcendentals=transcendentals, bytes_accessed=bytes_accessed
        ),
    )(x, *params)

    # Drop batch tail and lane padding (real out_dim = 10); return f32 like the PyTorch module.
    return out[:batch, :out_dim].astype(jnp.float32)


def neural_net_ref(x, params_f32, activation, bf16_matmul):
    """Pure-JAX reference. bf16_matmul=True mirrors the kernel's mixed precision."""
    num_linear = len(params_f32) // 2
    h = x.astype(jnp.bfloat16) if bf16_matmul else x
    for li in range(num_linear):
        w = params_f32[2 * li]
        b = params_f32[2 * li + 1].reshape(1, -1)
        if bf16_matmul:
            w = w.astype(jnp.bfloat16)
        h = jnp.dot(h, w, preferred_element_type=jnp.float32) + b
        if li < num_linear - 1:
            h = _apply_activation(h, activation)
            if bf16_matmul:
                h = h.astype(jnp.bfloat16)
    return h


if __name__ == "__main__":
    # NeuralNet(input_size=64, num_layers=3, num_nodes=32, activation='relu')
    # -> 4 Linear layers, final output dim 10.
    input_size, num_layers, num_nodes, activation = 64, 3, 32, "relu"
    out_dim = 10
    batch = 300  # not a multiple of 16/tile: exercises the partial-last-tile path

    key = jax.random.PRNGKey(0)
    key, kx = jax.random.split(key)
    x = jax.random.normal(kx, (batch, input_size), jnp.float32)
    params_f32 = init_params(key, input_size, num_layers, num_nodes)
    params = prepare_params(params_f32)

    out = neural_net_forward(
        x,
        params,
        activation=activation,
        out_dim=out_dim,
        act_in_bf16=use_bf16_activation(activation),
    )
    out = jax.block_until_ready(out)
    assert out.shape == (batch, out_dim), out.shape

    # Check vs a reference with identical mixed precision (bf16 MXU, f32 accum, bf16 writeback).
    ref_mixed = neural_net_ref(x, params_f32, activation, bf16_matmul=True)
    ref_mixed = ref_mixed.astype(jnp.bfloat16).astype(jnp.float32)
    err_mixed = float(jnp.max(jnp.abs(out - ref_mixed)))
    assert jnp.allclose(out, ref_mixed, atol=2e-2, rtol=2e-2), err_mixed

    # Sanity check vs the full-f32 PyTorch-equivalent forward (looser tol due to bf16 paths).
    ref_f32 = neural_net_ref(x, params_f32, activation, bf16_matmul=False)
    err_f32 = float(jnp.max(jnp.abs(out - ref_f32)))
    assert jnp.allclose(out, ref_f32, atol=5e-2, rtol=5e-2), err_f32

    print("KERNEL_OK")
</pallas_src>

<mosaic_0001>
module attributes {stable_mosaic.version = 11 : i64} {
  func.func @mlp_kernel(%arg0: i32, %arg1: memref<160x64xf32, #tpu.memory_space<vmem>>, %arg2: memref<64x128xbf16, #tpu.memory_space<vmem>>, %arg3: memref<1x128xf32, #tpu.memory_space<vmem>>, %arg4: memref<128x128xbf16, #tpu.memory_space<vmem>>, %arg5: memref<1x128xf32, #tpu.memory_space<vmem>>, %arg6: memref<128x128xbf16, #tpu.memory_space<vmem>>, %arg7: memref<1x128xf32, #tpu.memory_space<vmem>>, %arg8: memref<128x128xbf16, #tpu.memory_space<vmem>>, %arg9: memref<1x128xf32, #tpu.memory_space<vmem>>, %arg10: memref<160x128xbf16, #tpu.memory_space<vmem>>) attributes {dimension_semantics = [#tpu.dimension_semantics<parallel>], iteration_bounds = array<i64: 2>, scalar_prefetch = 0 : i64, scratch_operands = 0 : i64, tpu.core_type = #tpu.core_type<tc>, window_params = [{transform_indices = @transform_0, window_bounds = array<i64: 160, 64>}, {pipeline_mode = #tpu.pipeline_mode<synchronous>, transform_indices = @transform_1, window_bounds = array<i64: 64, 128>}, {pipeline_mode = #tpu.pipeline_mode<synchronous>, transform_indices = @transform_2, window_bounds = array<i64: 1, 128>}, {pipeline_mode = #tpu.pipeline_mode<synchronous>, transform_indices = @transform_3, window_bounds = array<i64: 128, 128>}, {pipeline_mode = #tpu.pipeline_mode<synchronous>, transform_indices = @transform_4, window_bounds = array<i64: 1, 128>}, {pipeline_mode = #tpu.pipeline_mode<synchronous>, transform_indices = @transform_5, window_bounds = array<i64: 128, 128>}, {pipeline_mode = #tpu.pipeline_mode<synchronous>, transform_indices = @transform_6, window_bounds = array<i64: 1, 128>}, {pipeline_mode = #tpu.pipeline_mode<synchronous>, transform_indices = @transform_7, window_bounds = array<i64: 128, 128>}, {pipeline_mode = #tpu.pipeline_mode<synchronous>, transform_indices = @transform_8, window_bounds = array<i64: 1, 128>}, {transform_indices = @transform_9, window_bounds = array<i64: 160, 128>}]} {
    %c0 = arith.constant 0 : index
    %c0_0 = arith.constant 0 : index
    %0 = vector.load %arg1[%c0, %c0_0] : memref<160x64xf32, #tpu.memory_space<vmem>>, vector<160x64xf32>
    %1 = arith.truncf %0 : vector<160x64xf32> to vector<160x64xbf16>
    %c0_1 = arith.constant 0 : index
    %c0_2 = arith.constant 0 : index
    %2 = vector.load %arg2[%c0_1, %c0_2] : memref<64x128xbf16, #tpu.memory_space<vmem>>, vector<64x128xbf16>
    %cst = arith.constant dense<0.000000e+00> : vector<160x128xf32>
    %3 = tpu.matmul %1, %2, %cst {dimension_numbers = #tpu.dot_dimension_numbers<[1], [0], [0], [1], [0, 0, 1, 1], [], []>} : vector<160x64xbf16>, vector<64x128xbf16>, vector<160x128xf32> -> vector<160x128xf32>
    %c0_3 = arith.constant 0 : index
    %c0_4 = arith.constant 0 : index
    %4 = vector.load %arg3[%c0_3, %c0_4] : memref<1x128xf32, #tpu.memory_space<vmem>>, vector<1x128xf32>
    %5 = vector.broadcast %4 : vector<1x128xf32> to vector<160x128xf32>
    %6 = arith.addf %3, %5 : vector<160x128xf32>
    %cst_5 = arith.constant 0.000000e+00 : f32
    %7 = vector.broadcast %cst_5 : f32 to vector<160x128xf32>
    %8 = arith.maximumf %6, %7 : vector<160x128xf32>
    %9 = arith.truncf %8 : vector<160x128xf32> to vector<160x128xbf16>
    %c0_6 = arith.constant 0 : index
    %c0_7 = arith.constant 0 : index
    %10 = vector.load %arg4[%c0_6, %c0_7] : memref<128x128xbf16, #tpu.memory_space<vmem>>, vector<128x128xbf16>
    %cst_8 = arith.constant dense<0.000000e+00> : vector<160x128xf32>
    %11 = tpu.matmul %9, %10, %cst_8 {dimension_numbers = #tpu.dot_dimension_numbers<[1], [0], [0], [1], [0, 0, 1, 1], [], []>} : vector<160x128xbf16>, vector<128x128xbf16>, vector<160x128xf32> -> vector<160x128xf32>
    %c0_9 = arith.constant 0 : index
    %c0_10 = arith.constant 0 : index
    %12 = vector.load %arg5[%c0_9, %c0_10] : memref<1x128xf32, #tpu.memory_space<vmem>>, vector<1x128xf32>
    %13 = vector.broadcast %12 : vector<1x128xf32> to vector<160x128xf32>
    %14 = arith.addf %11, %13 : vector<160x128xf32>
    %cst_11 = arith.constant 0.000000e+00 : f32
    %15 = vector.broadcast %cst_11 : f32 to vector<160x128xf32>
    %16 = arith.maximumf %14, %15 : vector<160x128xf32>
    %17 = arith.truncf %16 : vector<160x128xf32> to vector<160x128xbf16>
    %c0_12 = arith.constant 0 : index
    %c0_13 = arith.constant 0 : index
    %18 = vector.load %arg6[%c0_12, %c0_13] : memref<128x128xbf16, #tpu.memory_space<vmem>>, vector<128x128xbf16>
    %cst_14 = arith.constant dense<0.000000e+00> : vector<160x128xf32>
    %19 = tpu.matmul %17, %18, %cst_14 {dimension_numbers = #tpu.dot_dimension_numbers<[1], [0], [0], [1], [0, 0, 1, 1], [], []>} : vector<160x128xbf16>, vector<128x128xbf16>, vector<160x128xf32> -> vector<160x128xf32>
    %c0_15 = arith.constant 0 : index
    %c0_16 = arith.constant 0 : index
    %20 = vector.load %arg7[%c0_15, %c0_16] : memref<1x128xf32, #tpu.memory_space<vmem>>, vector<1x128xf32>
    %21 = vector.broadcast %20 : vector<1x128xf32> to vector<160x128xf32>
    %22 = arith.addf %19, %21 : vector<160x128xf32>
    %cst_17 = arith.constant 0.000000e+00 : f32
    %23 = vector.broadcast %cst_17 : f32 to vector<160x128xf32>
    %24 = arith.maximumf %22, %23 : vector<160x128xf32>
    %25 = arith.truncf %24 : vector<160x128xf32> to vector<160x128xbf16>
    %c0_18 = arith.constant 0 : index
    %c0_19 = arith.constant 0 : index
    %26 = vector.load %arg8[%c0_18, %c0_19] : memref<128x128xbf16, #tpu.memory_space<vmem>>, vector<128x128xbf16>
    %cst_20 = arith.constant dense<0.000000e+00> : vector<160x128xf32>
    %27 = tpu.matmul %25, %26, %cst_20 {dimension_numbers = #tpu.dot_dimension_numbers<[1], [0], [0], [1], [0, 0, 1, 1], [], []>} : vector<160x128xbf16>, vector<128x128xbf16>, vector<160x128xf32> -> vector<160x128xf32>
    %c0_21 = arith.constant 0 : index
    %c0_22 = arith.constant 0 : index
    %28 = vector.load %arg9[%c0_21, %c0_22] : memref<1x128xf32, #tpu.memory_space<vmem>>, vector<1x128xf32>
    %29 = vector.broadcast %28 : vector<1x128xf32> to vector<160x128xf32>
    %30 = arith.addf %27, %29 : vector<160x128xf32>
    %31 = arith.truncf %30 : vector<160x128xf32> to vector<160x128xbf16>
    %c0_23 = arith.constant 0 : index
    %c0_24 = arith.constant 0 : index
    %32 = vector.load %arg10[%c0_23, %c0_24] : memref<160x128xbf16, #tpu.memory_space<vmem>>, vector<160x128xbf16>
    tpu.vector_store %arg10[%c0_23, %c0_24], %31 {strides = array<i32>} : memref<160x128xbf16, #tpu.memory_space<vmem>>, vector<160x128xbf16>,
    return
  }
  func.func @transform_0(%arg0: i32) -> (i32, i32) {
    %c0_i32 = arith.constant 0 : i32
    %c0_i32_0 = arith.constant 0 : i32
    return %arg0, %c0_i32 : i32, i32
  }
  func.func @transform_1(%arg0: i32) -> (i32, i32) {
    %c0_i32 = arith.constant 0 : i32
    %c0_i32_0 = arith.constant 0 : i32
    %c0_i32_1 = arith.constant 0 : i32
    return %c0_i32, %c0_i32_0 : i32, i32
  }
  func.func @transform_2(%arg0: i32) -> (i32, i32) {
    %c0_i32 = arith.constant 0 : i32
    %c0_i32_0 = arith.constant 0 : i32
    %c0_i32_1 = arith.constant 0 : i32
    return %c0_i32, %c0_i32_0 : i32, i32
  }
  func.func @transform_3(%arg0: i32) -> (i32, i32) {
    %c0_i32 = arith.constant 0 : i32
    %c0_i32_0 = arith.constant 0 : i32
    %c0_i32_1 = arith.constant 0 : i32
    return %c0_i32, %c0_i32_0 : i32, i32
  }
  func.func @transform_4(%arg0: i32) -> (i32, i32) {
    %c0_i32 = arith.constant 0 : i32
    %c0_i32_0 = arith.constant 0 : i32
    %c0_i32_1 = arith.constant 0 : i32
    return %c0_i32, %c0_i32_0 : i32, i32
  }
  func.func @transform_5(%arg0: i32) -> (i32, i32) {
    %c0_i32 = arith.constant 0 : i32
    %c0_i32_0 = arith.constant 0 : i32
    %c0_i32_1 = arith.constant 0 : i32
    return %c0_i32, %c0_i32_0 : i32, i32
  }
  func.func @transform_6(%arg0: i32) -> (i32, i32) {
    %c0_i32 = arith.constant 0 : i32
    %c0_i32_0 = arith.constant 0 : i32
    %c0_i32_1 = arith.constant 0 : i32
    return %c0_i32, %c0_i32_0 : i32, i32
  }
  func.func @transform_7(%arg0: i32) -> (i32, i32) {
    %c0_i32 = arith.constant 0 : i32
    %c0_i32_0 = arith.constant 0 : i32
    %c0_i32_1 = arith.constant 0 : i32
    return %c0_i32, %c0_i32_0 : i32, i32
  }
  func.func @transform_8(%arg0: i32) -> (i32, i32) {
    %c0_i32 = arith.constant 0 : i32
    %c0_i32_0 = arith.constant 0 : i32
    %c0_i32_1 = arith.constant 0 : i32
    return %c0_i32, %c0_i32_0 : i32, i32
  }
  func.func @transform_9(%arg0: i32) -> (i32, i32) {
    %c0_i32 = arith.constant 0 : i32
    %c0_i32_0 = arith.constant 0 : i32
    return %arg0, %c0_i32 : i32, i32
  }
}

</mosaic_0001>

<bundles_post_ra>
// kernel: neural_net_forward.1
= control target key start
LH: loop header
LB: loop body
LE: loop exit
PB: predicated region body
PF: predicated region fallthrough
CT: control target
= control target key end

     0   :  { %s1832_s30 = smov 0   ;;  %s2079_s0 = inlined_call_operand.vmem [shape: f32[300,64], index: 0, kind: input, shape index: {}]   ;;  %s2080_s1 = inlined_call_operand.vmem [shape: bf16[64,128], index: 1, kind: input, shape index: {}]   ;;  %s2081_s2 = inlined_call_operand.vmem [shape: f32[1,128], index: 2, kind: input, shape index: {}]   ;;  %s2082_s3 = inlined_call_operand.vmem [shape: bf16[128,128], index: 3, kind: input, shape index: {}]   ;;  %s2083_s4 = inlined_call_operand.vmem [shape: f32[1,128], index: 4, kind: input, shape index: {}]   ;;  %s2084_s5 = inlined_call_operand.vmem [shape: bf16[128,128], index: 5, kind: input, shape index: {}]   ;;  %s2085_s6 = inlined_call_operand.vmem [shape: f32[1,128], index: 6, kind: input, shape index: {}]   ;;  %s2086_s7 = inlined_call_operand.vmem [shape: bf16[128,128], index: 7, kind: input, shape index: {}]   ;;  %s2087_s8 = inlined_call_operand.vmem [shape: f32[1,128], index: 8, kind: input, shape index: {}]   ;;  %s2088_s9 = inlined_call_operand.vmem [shape: bf16[320,128], index: 9, kind: output, shape index: {}]  }
   0x1 LB: > { %s1368_s10 = sadd.s32 4294967295, %s1780_s30   ;;  %p1372_p0 = scmp.ge.s32.totalorder %s1780_s30, 1  ;;  %s1780_s30 = sphi %s1832_s30, %s19_s30  }
   0x2   : > { %p296_p1 = scmp.lt.s32.totalorder %s1780_s30, 3 }
   0x4   : > { %p297_p2 = pnand %p1372_p0, %p296_p1 }
   0x5   : > { %v1746_v0 = vld [vmem:[%s2080_s1] sm:$0xff] (!%p297_p2)   ;;  %s1843_s13 = smul.u32 (!%p297_p2), 20, %s1368_s10  ;;  %v1747_v1 = vld [vmem:[%s2080_s1 + $0x8] sm:$0xff] (!%p297_p2)   ;;  %v1748_v2 = vld [vmem:[%s2080_s1 + $0x10] sm:$0xff] (!%p297_p2)   ;;  %vm426_vm0 = vcmask (!%p297_p2), 523264  }
   0x6   : > { %300 = sbr.rel (%p297_p2) target bundleno = 940 (0x3ac), region = 56  ;;  %1586 = vmatprep.subr.bf16.mxu0 (!%p297_p2), %v1746_v0  ;;  %v1750_v3 = vld [vmem:[%s2082_s3] sm:$0xff] (!%p297_p2)   ;;  %v1751_v4 = vld [vmem:[%s2082_s3 + $0x8] sm:$0xff] (!%p297_p2)   ;;  %v1749_v5 = vld [vmem:[%s2080_s1 + $0x18] sm:$0xff] (!%p297_p2)  }
   0x7   : > { %p341_p3 = scmp.lt.s32.totalorder (!%p297_p2), %s1843_s13, 37  ;;  %1587 = vmatpush3.bf16.msra.mxu0 (!%p297_p2), %v1746_v0  ;;  %1614 = vmatprep.subr.bf16.mxu1 (!%p297_p2), %v1750_v3  ;;  %v1752_v9 = vld [vmem:[%s2082_s3 + $0x10] sm:$0xff] (!%p297_p2)   ;;  %v1753_v14 = vld [vmem:[%s2082_s3 + $0x18] sm:$0xff] (!%p297_p2)   ;;  %v1754_v17 = vld [vmem:[%s2082_s3 + $0x20] sm:$0xff] (!%p297_p2)   ;;  %p351_p4 = scmp.lt.s32.totalorder (!%p297_p2), %s1843_s13, 39 }
   0x8   : > { %1588 = vmatprep.subr.bf16.mxu0 (!%p297_p2), %v1747_v1  ;;  %1615 = vmatpush3.bf16.msra.mxu1 (!%p297_p2), %v1750_v3  ;;  %v1755_v22 = vld [vmem:[%s2082_s3 + $0x28] sm:$0xff] (!%p297_p2)   ;;  %v1756_v40 = vld [vmem:[%s2082_s3 + $0x30] sm:$0xff] (!%p297_p2)   ;;  %v1757_v41 = vld [vmem:[%s2082_s3 + $0x38] sm:$0xff] (!%p297_p2)  }
   0x9   : > { %1616 = vmatprep.subr.bf16.mxu1 (!%p297_p2), %v1751_v4  ;;  %v1758_v42 = vld [vmem:[%s2084_s5] sm:$0xff] (!%p297_p2)   ;;  %v1759_v43 = vld [vmem:[%s2084_s5 + $0x8] sm:$0xff] (!%p297_p2)   ;;  %v1760_v44 = vld [vmem:[%s2084_s5 + $0x10] sm:$0xff] (!%p297_p2)  }
   0xa   : > { %v1761_v45 = vld [vmem:[%s2084_s5 + $0x18] sm:$0xff] (!%p297_p2)   ;;  %v1762_v46 = vld [vmem:[%s2084_s5 + $0x20] sm:$0xff] (!%p297_p2)   ;;  %v1763_v47 = vld [vmem:[%s2084_s5 + $0x28] sm:$0xff] (!%p297_p2)  }
   0xb   : > { %1589 = vmatpush3.bf16.msra.mxu0 (!%p297_p2), %v1747_v1  ;;  %v1936_v48 = vld [vmem:[%s2081_s2] ss:$0 sm:$0xff] (!%p297_p2) }
   0xc   : > { %1590 = vmatprep.subr.bf16.mxu0 (!%p297_p2), %v1748_v2  ;;  %1617 = vmatpush3.bf16.msra.mxu1 (!%p297_p2), %v1751_v4 }
   0xd   : > { %s342_s18 = scalar_select %p341_p3, %s1843_s13, 37  ;;  %1618 = vmatprep.subr.bf16.mxu1 %v1752_v9 }
   0xe   : > { %s2090_s13 = smov (!%p351_p4, %s1843_s13), 39 }
   0xf   : > { %s1373_s23 = sshll.u32 %s342_s18, 3  ;;  %1591 = vmatpush3.bf16.msra.mxu0 %v1748_v2  ;;  %s1374_s24 = sshll.u32 %s2090_s13, 2 }
  0x10   : > { %s1862_s26 = scalar_lea.vmem %s2079_s0, %s1373_s23  ;;  %1592 = vmatprep.subr.bf16.mxu0 %v1749_v5  ;;  %1619 = vmatpush3.bf16.msra.mxu1 %v1752_v9  ;;  %s2064_s27 = scalar_lea.vmem %s2088_s9, %s1374_s24 }
  0x11   : > { %v357_v6 = vld [vmem:[%s1862_s26] sm:$0xff]  ;;  %v358_v7 = vld [vmem:[%s1862_s26 + $0x8] sm:$0xff]  ;;  %v359_v10 = vld [vmem:[%s1862_s26 + $0x10] sm:$0xff]  ;;  %1620 = vmatprep.subr.bf16.mxu1 %v1753_v14 }
  0x12   : > { %v377_v8 = vpack.c.bf16 %v358_v7, %v357_v6  ;;  %v360_v11 = vld [vmem:[%s1862_s26 + $0x18] sm:$0xff]  ;;  %v361_v12 = vld [vmem:[%s1862_s26 + $0x20] sm:$0xff]  ;;  %v362_v13 = vld [vmem:[%s1862_s26 + $0x28] sm:$0xff] }
  0x13   : > { %v378_v15 = vpack.c.bf16 %v360_v11, %v359_v10  ;;  %1593 = vmatpush3.bf16.msra.mxu0 %v1749_v5  ;;  %v379_v16 = vpack.c.bf16 %v362_v13, %v361_v12  ;;  %v363_v18 = vld [vmem:[%s1862_s26 + $0x30] sm:$0xff]  ;;  %v364_v19 = vld [vmem:[%s1862_s26 + $0x38] sm:$0xff]  ;;  %v365_v20 = vld [vmem:[%s1862_s26 + $0x40] sm:$0xff] }
  0x14   : > { %1594 = vmatprep.mubr.msk.bf16.mxu0 %vm426_vm0, %v377_v8  ;;  %v366_v21 = vld [vmem:[%s1862_s26 + $0x48] sm:$0xff]  ;;  %1621 = vmatpush3.bf16.msra.mxu1 %v1753_v14  ;;  %v380_v23 = vpack.c.bf16 %v364_v19, %v363_v18  ;;  %v367_v25 = vld [vmem:[%s1862_s26 + $0x50] sm:$0xff]  ;;  %v368_v26 = vld [vmem:[%s1862_s26 + $0x58] sm:$0xff] }
  0x15   : > { %1622 = vmatprep.subr.bf16.mxu1 %v1754_v17  ;;  %v381_v24 = vpack.c.bf16 %v366_v21, %v365_v20  ;;  %v369_v27 = vld [vmem:[%s1862_s26 + $0x60] sm:$0xff]  ;;  %v370_v28 = vld [vmem:[%s1862_s26 + $0x68] sm:$0xff]  ;;  %v382_v29 = vpack.c.bf16 %v368_v26, %v367_v25  ;;  %v371_v31 = vld [vmem:[%s1862_s26 + $0x70] sm:$0xff]  ;;  %1650 = vmatprep.subr.bf16.mxu0 %v1758_v42 }
  0x16   : > { %1595 = vmatmul.mubr.msk.bf16.vlgmr.msra.gmra.mrb[0].mxu0 %vm426_vm0, %v378_v15  ;;  %v383_v30 = vpack.c.bf16 %v370_v28, %v369_v27  ;;  %v372_v32 = vld [vmem:[%s1862_s26 + $0x78] sm:$0xff]  ;;  %v373_v33 = vld [vmem:[%s1862_s26 + $0x80] sm:$0xff]  ;;  %v374_v34 = vld [vmem:[%s1862_s26 + $0x88] sm:$0xff] }
  0x17   : > { %1598 = vmatprep.mubr.msk.bf16.mxu0 %vm426_vm0, %v379_v16  ;;  %v384_v35 = vpack.c.bf16 %v372_v32, %v371_v31  ;;  %v385_v36 = vpack.c.bf16 %v374_v34, %v373_v33  ;;  %v375_v37 = vld [vmem:[%s1862_s26 + $0x90] sm:$0xff]  ;;  %v376_v38 = vld [vmem:[%s1862_s26 + $0x98] sm:$0xff]  ;;  %1651 = vmatpush3.bf16.msra.mxu0 %v1758_v42 }
  0x18   : > { %1623 = vmatpush3.bf16.msra.mxu1 %v1754_v17  ;;  %v386_v39 = vpack.c.bf16 %v376_v38, %v375_v37  ;;  %1652 = vmatprep.subr.bf16.mxu0 %v1759_v43 }
  0x19   : > { %1624 = vmatprep.subr.bf16.mxu1 %v1755_v22 }
  0x1b   : > { %1653 = vmatpush3.bf16.msra.mxu0 %v1759_v43 }
  0x1c   : > { %1625 = vmatpush3.bf16.msra.mxu1 %v1755_v22  ;;  %1654 = vmatprep.subr.bf16.mxu0 %v1760_v44 }
  0x1d   : > { %1626 = vmatprep.subr.bf16.mxu1 %v1756_v40 }
  0x1e   : > { %1599 = vmatmul.mubr.msk.bf16.gmra.mrb[4].mxu0 %vm426_vm0, %v380_v23 }
  0x1f   : > { %1602 = vmatprep.mubr.msk.bf16.mxu0 %vm426_vm0, %v381_v24  ;;  %1655 = vmatpush3.bf16.msra.mxu0 %v1760_v44 }
  0x20   : > { %1627 = vmatpush3.bf16.msra.mxu1 %v1756_v40  ;;  %1656 = vmatprep.subr.bf16.mxu0 %v1761_v45 }
  0x21   : > { %1628 = vmatprep.subr.bf16.mxu1 %v1757_v41 }
  0x23   : > { %1657 = vmatpush3.bf16.msra.mxu0 %v1761_v45 }
  0x24   : > { %1629 = vmatpush3.bf16.msra.mxu1 %v1757_v41  ;;  %1658 = vmatprep.subr.bf16.mxu0 %v1762_v46 }
  0x26   : > { %1603 = vmatmul.mubr.msk.bf16.gmra.mrb[8].mxu0 %vm426_vm0, %v382_v29 }
  0x27   : > { %1606 = vmatprep.mubr.msk.bf16.mxu0 %vm426_vm0, %v383_v30  ;;  %1659 = vmatpush3.bf16.msra.mxu0 %v1762_v46 }
  0x28   : > { %1660 = vmatprep.subr.bf16.mxu0 %v1763_v47 }
  0x2b   : > { %1661 = vmatpush3.bf16.msra.mxu0 %v1763_v47 }
  0x2e   : > { %1607 = vmatmul.mubr.msk.bf16.gmra.mrb[12].mxu0 %vm426_vm0, %v384_v35 }
  0x2f   : > { %1610 = vmatprep.mubr.msk.bf16.mxu0 %vm426_vm0, %v385_v36 }
  0x36   : > { %1611 = vmatmul.mubr.msk.bf16.gmra.mrb[16].mxu0 %vm426_vm0, %v386_v39 }
  0xe9   : > { %v1596_v49 = vpop.f32.mrb[0].mxu0 }
  0xea   : > { %v500_v50 = vadd.f32 %v1596_v49, %v1936_v48  ;;  %v491_v51 = vpop.f32.mrb[1].mxu0 }
  0xeb   : > { %v492_v52 = vadd.f32 %v1936_v48, %v491_v51  ;;  %v1597_v53 = vpop.f32.mrb[2].mxu0 }
  0xec   : > { %v503_v54 = vadd.f32 %v1597_v53, %v1936_v48  ;;  %v494_v55 = vpop.f32.mrb[3].mxu0  ;;  %v572_v57 = vmax.f32 %v500_v50, 0.0 }
  0xed   : > { %v495_v56 = vadd.f32 %v1936_v48, %v494_v55  ;;  %v570_v59 = vmax.f32 %v492_v52, 0.0 }
  0xee   : > { %v573_v58 = vmax.f32 %v503_v54, 0.0 }
  0xef   : > { %v571_v60 = vmax.f32 %v495_v56, 0.0  ;;  %v1764_v56 = vld [vmem:[%s2084_s5 + $0x30] sm:$0xff]  }
  0xf0   : > { %v591_v61 = vpack.c.bf16 %v573_v58, %v572_v57  ;;  %1662 = vmatprep.subr.bf16.mxu0 %v1764_v56  ;;  %v1765_v57 = vld [vmem:[%s2084_s5 + $0x38] sm:$0xff]   ;;  %v1767_v58 = vld [vmem:[%s2086_s7 + $0x8] sm:$0xff]  }
  0xf1   : > { %v1600_v62 = vpop.f32.mrb[4].mxu0  ;;  %v590_v63 = vpack.c.bf16 %v571_v60, %v570_v59  ;;  %1663 = vmatpush3.bf16.msra.mxu0 %v1764_v56  ;;  %v1768_v59 = vld [vmem:[%s2086_s7 + $0x10] sm:$0xff]   ;;  %v1976_v60 = vld [vmem:[%s2086_s7 + $0x18] sm:$0xff]  }
  0xf2   : > { %v516_v0 = vadd.f32 %v1600_v62, %v1936_v48  ;;  %v507_v1 = vpop.f32.mrb[5].mxu0  ;;  %1664 = vmatprep.subr.bf16.mxu0 %v1765_v57  ;;  %v1989_v62 = vld [vmem:[%s2086_s7 + $0x28] sm:$0xff]  }
  0xf3   : > { %v508_v2 = vadd.f32 %v1936_v48, %v507_v1  ;;  %v1601_v3 = vpop.f32.mrb[6].mxu0  ;;  %1630 = vmatprep.mubr.bf16.mxu1 %v590_v63  ;;  %v1997_v63 = vld [vmem:[%s2083_s4] ss:$0 sm:$0xff] }
  0xf4   : > { %v519_v4 = vadd.f32 %v1601_v3, %v1936_v48  ;;  %v510_v5 = vpop.f32.mrb[7].mxu0  ;;  %1631 = vmatmul.mubr.bf16.vlgmr.msra.gmra.mrb[0].mxu1 %v591_v61  ;;  %v576_v7 = vmax.f32 %v516_v0, 0.0  ;;  %v1982_v61 = vld [vmem:[%s2086_s7 + $0x20] sm:$0xff]  }
  0xf5   : > { %v511_v6 = vadd.f32 %v1936_v48, %v510_v5  ;;  %v574_v9 = vmax.f32 %v508_v2, 0.0  ;;  %1665 = vmatpush3.bf16.msra.mxu0 %v1765_v57 }
  0xf6   : > { %v577_v8 = vmax.f32 %v519_v4, 0.0 }
  0xf7   : > { %v575_v10 = vmax.f32 %v511_v6, 0.0 }
  0xf8   : > { %v593_v11 = vpack.c.bf16 %v577_v8, %v576_v7 }
  0xf9   : > { %v592_v12 = vpack.c.bf16 %v575_v10, %v574_v9  ;;  %v1604_v13 = vpop.f32.mrb[8].mxu0 }
  0xfa   : > { %v532_v14 = vadd.f32 %v1604_v13, %v1936_v48  ;;  %v523_v15 = vpop.f32.mrb[9].mxu0 }
  0xfb   : > { %v524_v16 = vadd.f32 %v1936_v48, %v523_v15  ;;  %v1605_v17 = vpop.f32.mrb[10].mxu0  ;;  %1634 = vmatprep.mubr.bf16.mxu1 %v592_v12 }
  0xfc   : > { %v535_v18 = vadd.f32 %v1605_v17, %v1936_v48  ;;  %v526_v19 = vpop.f32.mrb[11].mxu0  ;;  %1635 = vmatmul.mubr.bf16.gmra.mrb[4].mxu1 %v593_v11  ;;  %v580_v21 = vmax.f32 %v532_v14, 0.0 }
  0xfd   : > { %v527_v20 = vadd.f32 %v1936_v48, %v526_v19  ;;  %v578_v23 = vmax.f32 %v524_v16, 0.0 }
  0xfe   : > { %v581_v22 = vmax.f32 %v535_v18, 0.0 }
  0xff   : > { %v579_v24 = vmax.f32 %v527_v20, 0.0 }
 0x100   : > { %v595_v25 = vpack.c.bf16 %v581_v22, %v580_v21 }
 0x101   : > { %v594_v26 = vpack.c.bf16 %v579_v24, %v578_v23  ;;  %v1608_v27 = vpop.f32.mrb[12].mxu0 }
 0x102   : > { %v548_v28 = vadd.f32 %v1608_v27, %v1936_v48  ;;  %v539_v29 = vpop.f32.mrb[13].mxu0 }
 0x103   : > { %v540_v30 = vadd.f32 %v1936_v48, %v539_v29  ;;  %v1609_v31 = vpop.f32.mrb[14].mxu0  ;;  %1638 = vmatprep.mubr.bf16.mxu1 %v594_v26 }
 0x104   : > { %v551_v32 = vadd.f32 %v1609_v31, %v1936_v48  ;;  %v542_v33 = vpop.f32.mrb[15].mxu0  ;;  %1639 = vmatmul.mubr.bf16.gmra.mrb[8].mxu1 %v595_v25  ;;  %v584_v35 = vmax.f32 %v548_v28, 0.0 }
 0x105   : > { %v543_v34 = vadd.f32 %v1936_v48, %v542_v33  ;;  %v582_v37 = vmax.f32 %v540_v30, 0.0 }
 0x106   : > { %v585_v36 = vmax.f32 %v551_v32, 0.0 }
 0x107   : > { %v583_v38 = vmax.f32 %v543_v34, 0.0 }
 0x108   : > { %v597_v39 = vpack.c.bf16 %v585_v36, %v584_v35 }
 0x109   : > { %v596_v40 = vpack.c.bf16 %v583_v38, %v582_v37  ;;  %v1612_v41 = vpop.f32.mrb[16].mxu0 }
 0x10a   : > { %v564_v42 = vadd.f32 %v1612_v41, %v1936_v48  ;;  %v555_v43 = vpop.f32.mrb[17].mxu0 }
 0x10b   : > { %v556_v44 = vadd.f32 %v1936_v48, %v555_v43  ;;  %v1613_v45 = vpop.f32.mrb[18].mxu0  ;;  %1642 = vmatprep.mubr.bf16.mxu1 %v596_v40 }
 0x10c   : > { %v567_v46 = vadd.f32 %v1613_v45, %v1936_v48  ;;  %v558_v47 = vpop.f32.mrb[19].mxu0  ;;  %1643 = vmatmul.mubr.bf16.gmra.mrb[12].mxu1 %v597_v39  ;;  %v588_v50 = vmax.f32 %v564_v42, 0.0 }
 0x10d   : > { %v559_v49 = vadd.f32 %v1936_v48, %v558_v47  ;;  %v586_v52 = vmax.f32 %v556_v44, 0.0  ;;  %v1766_v48 = vld [vmem:[%s2086_s7] sm:$0xff]  }
 0x10e   : > { %v589_v51 = vmax.f32 %v567_v46, 0.0  ;;  %1722 = vmatprep.subr.bf16.mxu1 %v1766_v48  ;;  %1686 = vmatprep.subr.bf16.mxu0 %v1766_v48 }
 0x10f   : > { %v587_v53 = vmax.f32 %v559_v49, 0.0  ;;  %1730 = vmatpush3.bf16.msra.mxu1 %v1766_v48 }
 0x110   : > { %v599_v54 = vpack.c.bf16 %v589_v51, %v588_v50  ;;  %1723 = vmatprep.subr.bf16.mxu1 %v1767_v58 }
 0x111   : > { %v598_v55 = vpack.c.bf16 %v587_v53, %v586_v52 }
 0x113   : > { %1646 = vmatprep.mubr.bf16.mxu1 %v598_v55  ;;  %1731 = vmatpush3.bf16.msra.mxu1 %v1767_v58 }
 0x114   : > { %1647 = vmatmul.mubr.bf16.gmra.mrb[16].mxu1 %v599_v54  ;;  %1724 = vmatprep.subr.bf16.mxu1 %v1768_v59 }
 0x117   : > { %1732 = vmatpush3.bf16.msra.mxu1 %v1768_v59 }
 0x118   : > { %1725 = vmatprep.subr.bf16.mxu1 %v1976_v60 }
 0x11b   : > { %1733 = vmatpush3.bf16.msra.mxu1 %v1976_v60 }
 0x11c   : > { %1726 = vmatprep.subr.bf16.mxu1 %v1982_v61 }
 0x11f   : > { %1734 = vmatpush3.bf16.msra.mxu1 %v1982_v61 }
 0x120   : > { %1727 = vmatprep.subr.bf16.mxu1 %v1989_v62 }
 0x123   : > { %1735 = vmatpush3.bf16.msra.mxu1 %v1989_v62 }
 0x1c7   : > { %v1632_v0 = vpop.f32.mrb[0].mxu1 }
 0x1c8   : > { %v714_v1 = vadd.f32 %v1632_v0, %v1997_v63  ;;  %v705_v2 = vpop.f32.mrb[1].mxu1 }
 0x1c9   : > { %v706_v3 = vadd.f32 %v1997_v63, %v705_v2  ;;  %v1633_v4 = vpop.f32.mrb[2].mxu1 }
 0x1ca   : > { %v717_v5 = vadd.f32 %v1633_v4, %v1997_v63  ;;  %v708_v6 = vpop.f32.mrb[3].mxu1  ;;  %v786_v8 = vmax.f32 %v714_v1, 0.0 }
 0x1cb   : > { %v709_v7 = vadd.f32 %v1997_v63, %v708_v6  ;;  %v784_v10 = vmax.f32 %v706_v3, 0.0 }
 0x1cc   : > { %v787_v9 = vmax.f32 %v717_v5, 0.0 }
 0x1cd   : > { %v785_v11 = vmax.f32 %v709_v7, 0.0 }
 0x1ce   : > { %v805_v12 = vpack.c.bf16 %v787_v9, %v786_v8  ;;  %v2034_v8 = vld [vmem:[%s2085_s6] ss:$0 sm:$0xff] }
 0x1cf   : > { %v804_v13 = vpack.c.bf16 %v785_v11, %v784_v10  ;;  %v1636_v14 = vpop.f32.mrb[4].mxu1 }
 0x1d0   : > { %v730_v15 = vadd.f32 %v1636_v14, %v1997_v63  ;;  %v721_v16 = vpop.f32.mrb[5].mxu1 }
 0x1d1   : > { %v722_v17 = vadd.f32 %v1997_v63, %v721_v16  ;;  %v1637_v18 = vpop.f32.mrb[6].mxu1  ;;  %1666 = vmatprep.mubr.bf16.mxu0 %v804_v13 }
 0x1d2   : > { %v733_v19 = vadd.f32 %v1637_v18, %v1997_v63  ;;  %v724_v20 = vpop.f32.mrb[7].mxu1  ;;  %1667 = vmatmul.mubr.bf16.vlgmr.msra.gmra.mrb[20].mxu0 %v805_v12  ;;  %v790_v22 = vmax.f32 %v730_v15, 0.0 }
 0x1d3   : > { %v725_v21 = vadd.f32 %v1997_v63, %v724_v20  ;;  %1687 = vmatpush3.bf16.msra.mxu0 %v1766_v48  ;;  %v788_v24 = vmax.f32 %v722_v17, 0.0 }
 0x1d4   : > { %v791_v23 = vmax.f32 %v733_v19, 0.0  ;;  %1688 = vmatprep.subr.bf16.mxu0 %v1767_v58 }
 0x1d5   : > { %v789_v25 = vmax.f32 %v725_v21, 0.0 }
 0x1d6   : > { %v807_v26 = vpack.c.bf16 %v791_v23, %v790_v22 }
 0x1d7   : > { %v806_v27 = vpack.c.bf16 %v789_v25, %v788_v24  ;;  %v1640_v28 = vpop.f32.mrb[8].mxu1  ;;  %1689 = vmatpush3.bf16.msra.mxu0 %v1767_v58 }
 0x1d8   : > { %v746_v29 = vadd.f32 %v1640_v28, %v1997_v63  ;;  %v737_v30 = vpop.f32.mrb[9].mxu1  ;;  %1690 = vmatprep.subr.bf16.mxu0 %v1768_v59 }
 0x1d9   : > { %v738_v31 = vadd.f32 %v1997_v63, %v737_v30  ;;  %v1641_v32 = vpop.f32.mrb[10].mxu1  ;;  %1670 = vmatprep.mubr.bf16.mxu0 %v806_v27 }
 0x1da   : > { %v749_v33 = vadd.f32 %v1641_v32, %v1997_v63  ;;  %v740_v34 = vpop.f32.mrb[11].mxu1  ;;  %1671 = vmatmul.mubr.bf16.gmra.mrb[24].mxu0 %v807_v26  ;;  %v794_v36 = vmax.f32 %v746_v29, 0.0 }
 0x1db   : > { %v741_v35 = vadd.f32 %v1997_v63, %v740_v34  ;;  %1691 = vmatpush3.bf16.msra.mxu0 %v1768_v59  ;;  %v792_v38 = vmax.f32 %v738_v31, 0.0 }
 0x1dc   : > { %v795_v37 = vmax.f32 %v749_v33, 0.0  ;;  %1692 = vmatprep.subr.bf16.mxu0 %v1976_v60 }
 0x1dd   : > { %v793_v39 = vmax.f32 %v741_v35, 0.0 }
 0x1de   : > { %v809_v40 = vpack.c.bf16 %v795_v37, %v794_v36 }
 0x1df   : > { %v808_v41 = vpack.c.bf16 %v793_v39, %v792_v38  ;;  %v1644_v42 = vpop.f32.mrb[12].mxu1  ;;  %1693 = vmatpush3.bf16.msra.mxu0 %v1976_v60 }
 0x1e0   : > { %v762_v43 = vadd.f32 %v1644_v42, %v1997_v63  ;;  %v753_v44 = vpop.f32.mrb[13].mxu1  ;;  %1694 = vmatprep.subr.bf16.mxu0 %v1982_v61 }
 0x1e1   : > { %v754_v45 = vadd.f32 %v1997_v63, %v753_v44  ;;  %v1645_v46 = vpop.f32.mrb[14].mxu1  ;;  %1674 = vmatprep.mubr.bf16.mxu0 %v808_v41 }
 0x1e2   : > { %v765_v47 = vadd.f32 %v1645_v46, %v1997_v63  ;;  %v756_v49 = vpop.f32.mrb[15].mxu1  ;;  %1675 = vmatmul.mubr.bf16.gmra.mrb[28].mxu0 %v809_v40  ;;  %v798_v51 = vmax.f32 %v762_v43, 0.0 }
 0x1e3   : > { %v757_v50 = vadd.f32 %v1997_v63, %v756_v49  ;;  %1695 = vmatpush3.bf16.msra.mxu0 %v1982_v61  ;;  %v796_v53 = vmax.f32 %v754_v45, 0.0 }
 0x1e4   : > { %v799_v52 = vmax.f32 %v765_v47, 0.0  ;;  %1696 = vmatprep.subr.bf16.mxu0 %v1989_v62 }
 0x1e5   : > { %v797_v54 = vmax.f32 %v757_v50, 0.0 }
 0x1e6   : > { %v811_v55 = vpack.c.bf16 %v799_v52, %v798_v51 }
 0x1e7   : > { %v810_v56 = vpack.c.bf16 %v797_v54, %v796_v53  ;;  %v1648_v57 = vpop.f32.mrb[16].mxu1  ;;  %1697 = vmatpush3.bf16.msra.mxu0 %v1989_v62  ;;  %v1772_v62 = vld [vmem:[%s2086_s7 + $0x30] sm:$0xff]  }
 0x1e8   : > { %v778_v48 = vadd.f32 %v1648_v57, %v1997_v63  ;;  %v769_v58 = vpop.f32.mrb[17].mxu1  ;;  %1698 = vmatprep.subr.bf16.mxu0 %v1772_v62  ;;  %1728 = vmatprep.subr.bf16.mxu1 %v1772_v62 }
 0x1e9   : > { %v770_v59 = vadd.f32 %v1997_v63, %v769_v58  ;;  %v1649_v60 = vpop.f32.mrb[18].mxu1  ;;  %1678 = vmatprep.mubr.bf16.mxu0 %v810_v56  ;;  %1736 = vmatpush3.bf16.msra.mxu1 %v1772_v62 }
 0x1ea   : > { %v781_v61 = vadd.f32 %v1649_v60, %v1997_v63  ;;  %v772_v0 = vpop.f32.mrb[19].mxu1  ;;  %1679 = vmatmul.mubr.bf16.gmra.mrb[32].mxu0 %v811_v55  ;;  %v802_v2 = vmax.f32 %v778_v48, 0.0 }
 0x1eb   : > { %v773_v1 = vadd.f32 %v1997_v63, %v772_v0  ;;  %v800_v4 = vmax.f32 %v770_v59, 0.0  ;;  %1699 = vmatpush3.bf16.msra.mxu0 %v1772_v62  ;;  %v1773_v63 = vld [vmem:[%s2086_s7 + $0x38] sm:$0xff]  }
 0x1ec   : > { %v803_v3 = vmax.f32 %v781_v61, 0.0  ;;  %1700 = vmatprep.subr.bf16.mxu0 %v1773_v63  ;;  %1729 = vmatprep.subr.bf16.mxu1 %v1773_v63 }
 0x1ed   : > { %v801_v5 = vmax.f32 %v773_v1, 0.0  ;;  %1737 = vmatpush3.bf16.msra.mxu1 %v1773_v63 }
 0x1ee   : > { %v813_v6 = vpack.c.bf16 %v803_v3, %v802_v2 }
 0x1ef   : > { %v812_v7 = vpack.c.bf16 %v801_v5, %v800_v4  ;;  %1701 = vmatpush3.bf16.msra.mxu0 %v1773_v63 }
 0x1f1   : > { %1682 = vmatprep.mubr.bf16.mxu0 %v812_v7 }
 0x1f2   : > { %1683 = vmatmul.mubr.bf16.gmra.mrb[36].mxu0 %v813_v6 }
 0x2a5   : > { %v1668_v9 = vpop.f32.mrb[20].mxu0 }
 0x2a6   : > { %v928_v10 = vadd.f32 %v1668_v9, %v2034_v8  ;;  %v919_v11 = vpop.f32.mrb[21].mxu0 }
 0x2a7   : > { %v920_v12 = vadd.f32 %v2034_v8, %v919_v11  ;;  %v1669_v13 = vpop.f32.mrb[22].mxu0 }
 0x2a8   : > { %v931_v14 = vadd.f32 %v1669_v13, %v2034_v8  ;;  %v922_v15 = vpop.f32.mrb[23].mxu0  ;;  %v1000_v17 = vmax.f32 %v928_v10, 0.0 }
 0x2a9   : > { %v923_v16 = vadd.f32 %v2034_v8, %v922_v15  ;;  %v998_v19 = vmax.f32 %v920_v12, 0.0 }
 0x2aa   : > { %v1001_v18 = vmax.f32 %v931_v14, 0.0 }
 0x2ab   : > { %v999_v20 = vmax.f32 %v923_v16, 0.0 }
 0x2ac   : > { %v1019_v21 = vpack.c.bf16 %v1001_v18, %v1000_v17  ;;  %v1408_v17 = vld [vmem:[%s2087_s8] ss:$0 sm:$0xff] }
 0x2ad   : > { %v1018_v22 = vpack.c.bf16 %v999_v20, %v998_v19  ;;  %v1672_v23 = vpop.f32.mrb[24].mxu0 }
 0x2ae   : > { %v944_v24 = vadd.f32 %v1672_v23, %v2034_v8  ;;  %v935_v25 = vpop.f32.mrb[25].mxu0 }
 0x2af   : > { %v936_v26 = vadd.f32 %v2034_v8, %v935_v25  ;;  %v1673_v27 = vpop.f32.mrb[26].mxu0  ;;  %1702 = vmatprep.mubr.bf16.mxu0 %v1018_v22 }
 0x2b0   : > { %v947_v28 = vadd.f32 %v1673_v27, %v2034_v8  ;;  %v938_v29 = vpop.f32.mrb[27].mxu0  ;;  %1703 = vmatmul.mubr.bf16.vlgmr.msra.gmra.mrb[40].mxu0 %v1019_v21  ;;  %v1004_v31 = vmax.f32 %v944_v24, 0.0 }
 0x2b1   : > { %v939_v30 = vadd.f32 %v2034_v8, %v938_v29  ;;  %v1002_v33 = vmax.f32 %v936_v26, 0.0 }
 0x2b2   : > { %v1005_v32 = vmax.f32 %v947_v28, 0.0 }
 0x2b3   : > { %v1003_v34 = vmax.f32 %v939_v30, 0.0 }
 0x2b4   : > { %v1021_v35 = vpack.c.bf16 %v1005_v32, %v1004_v31 }
 0x2b5   : > { %v1020_v36 = vpack.c.bf16 %v1003_v34, %v1002_v33  ;;  %v1676_v37 = vpop.f32.mrb[28].mxu0 }
 0x2b6   : > { %v960_v38 = vadd.f32 %v1676_v37, %v2034_v8  ;;  %v951_v39 = vpop.f32.mrb[29].mxu0 }
 0x2b7   : > { %v952_v40 = vadd.f32 %v2034_v8, %v951_v39  ;;  %v1677_v41 = vpop.f32.mrb[30].mxu0  ;;  %1706 = vmatprep.mubr.bf16.mxu1 %v1020_v36 }
 0x2b8   : > { %v963_v42 = vadd.f32 %v1677_v41, %v2034_v8  ;;  %v954_v43 = vpop.f32.mrb[31].mxu0  ;;  %1707 = vmatmul.mubr.bf16.vlgmr.msra.gmra.mrb[20].mxu1 %v1021_v35  ;;  %v1008_v45 = vmax.f32 %v960_v38, 0.0 }
 0x2b9   : > { %v955_v44 = vadd.f32 %v2034_v8, %v954_v43  ;;  %v1006_v47 = vmax.f32 %v952_v40, 0.0 }
 0x2ba   : > { %v1009_v46 = vmax.f32 %v963_v42, 0.0 }
 0x2bb   : > { %v1007_v49 = vmax.f32 %v955_v44, 0.0 }
 0x2bc   : > { %v1023_v50 = vpack.c.bf16 %v1009_v46, %v1008_v45 }
 0x2bd   : > { %v1022_v51 = vpack.c.bf16 %v1007_v49, %v1006_v47  ;;  %v1680_v52 = vpop.f32.mrb[32].mxu0 }
 0x2be   : > { %v976_v53 = vadd.f32 %v1680_v52, %v2034_v8  ;;  %v967_v54 = vpop.f32.mrb[33].mxu0 }
 0x2bf   : > { %v968_v55 = vadd.f32 %v2034_v8, %v967_v54  ;;  %v1681_v56 = vpop.f32.mrb[34].mxu0  ;;  %1710 = vmatprep.mubr.bf16.mxu1 %v1022_v51 }
 0x2c0   : > { %v979_v57 = vadd.f32 %v1681_v56, %v2034_v8  ;;  %v970_v48 = vpop.f32.mrb[35].mxu0  ;;  %1711 = vmatmul.mubr.bf16.gmra.mrb[24].mxu1 %v1023_v50  ;;  %v1012_v59 = vmax.f32 %v976_v53, 0.0 }
 0x2c1   : > { %v971_v58 = vadd.f32 %v2034_v8, %v970_v48  ;;  %v1010_v61 = vmax.f32 %v968_v55, 0.0 }
 0x2c2   : > { %v1013_v60 = vmax.f32 %v979_v57, 0.0 }
 0x2c3   : > { %v1011_v0 = vmax.f32 %v971_v58, 0.0 }
 0x2c4   : > { %v1025_v1 = vpack.c.bf16 %v1013_v60, %v1012_v59 }
 0x2c5   : > { %v1024_v2 = vpack.c.bf16 %v1011_v0, %v1010_v61  ;;  %v1684_v3 = vpop.f32.mrb[36].mxu0 }
 0x2c6   : > { %v992_v4 = vadd.f32 %v1684_v3, %v2034_v8  ;;  %v983_v5 = vpop.f32.mrb[37].mxu0 }
 0x2c7   : > { %v984_v6 = vadd.f32 %v2034_v8, %v983_v5  ;;  %v1685_v7 = vpop.f32.mrb[38].mxu0  ;;  %1714 = vmatprep.mubr.bf16.mxu1 %v1024_v2 }
 0x2c8   : > { %v995_v62 = vadd.f32 %v1685_v7, %v2034_v8  ;;  %v986_v63 = vpop.f32.mrb[39].mxu0  ;;  %1715 = vmatmul.mubr.bf16.gmra.mrb[28].mxu1 %v1025_v1  ;;  %v1016_v10 = vmax.f32 %v992_v4, 0.0 }
 0x2c9   : > { %v987_v9 = vadd.f32 %v2034_v8, %v986_v63  ;;  %v1014_v12 = vmax.f32 %v984_v6, 0.0 }
 0x2ca   : > { %v1017_v11 = vmax.f32 %v995_v62, 0.0 }
 0x2cb   : > { %v1015_v13 = vmax.f32 %v987_v9, 0.0 }
 0x2cc   : > { %v1027_v14 = vpack.c.bf16 %v1017_v11, %v1016_v10 }
 0x2cd   : > { %v1026_v15 = vpack.c.bf16 %v1015_v13, %v1014_v12 }
 0x2cf   : > { %1718 = vmatprep.mubr.bf16.mxu1 %v1026_v15 }
 0x2d0   : > { %1719 = vmatmul.mubr.bf16.gmra.mrb[32].mxu1 %v1027_v14 }
 0x383   : > { %v1704_v16 = vpop.f32.mrb[40].mxu0 }
 0x384   : > { %v1133_v18 = vpop.f32.mrb[41].mxu0  ;;  %v1142_v20 = vadd.f32 %v1704_v16, %v1408_v17 }
 0x385   : > { %v1705_v19 = vpop.f32.mrb[42].mxu0  ;;  %v1134_v22 = vadd.f32 %v1408_v17, %v1133_v18 }
 0x386   : > { %v1145_v8 = vadd.f32 %v1705_v19, %v1408_v17  ;;  %v1136_v21 = vpop.f32.mrb[43].mxu0 }
 0x387   : > { %v1137_v23 = vadd.f32 %v1408_v17, %v1136_v21 }
 0x388   : > { %v1467_v24 = vpack.c.bf16 %v1145_v8, %v1142_v20 }
 0x389   : > { %v1462_v25 = vpack.c.bf16 %v1137_v23, %v1134_v22 }
 0x38a   : > { %1509 = vst [vmem:[%s2064_s27 + $0x8] sm:$0xff] %v1467_v24  }
 0x38b   : > { %1463 = vst [vmem:[%s2064_s27] sm:$0xff] %v1462_v25   ;;  %v1708_v26 = vpop.f32.mrb[20].mxu1 }
 0x38c   : > { %v1149_v27 = vpop.f32.mrb[21].mxu1  ;;  %v1158_v29 = vadd.f32 %v1708_v26, %v1408_v17 }
 0x38d   : > { %v1709_v28 = vpop.f32.mrb[22].mxu1  ;;  %v1150_v32 = vadd.f32 %v1408_v17, %v1149_v27 }
 0x38e   : > { %v1161_v30 = vadd.f32 %v1709_v28, %v1408_v17  ;;  %v1152_v31 = vpop.f32.mrb[23].mxu1 }
 0x38f   : > { %v1153_v33 = vadd.f32 %v1408_v17, %v1152_v31 }
 0x390   : > { %v1477_v34 = vpack.c.bf16 %v1161_v30, %v1158_v29 }
 0x391   : > { %v1472_v35 = vpack.c.bf16 %v1153_v33, %v1150_v32 }
 0x392   : > { %1511 = vst [vmem:[%s2064_s27 + $0x18] sm:$0xff] %v1477_v34  }
 0x393   : > { %1510 = vst [vmem:[%s2064_s27 + $0x10] sm:$0xff] %v1472_v35   ;;  %v1712_v36 = vpop.f32.mrb[24].mxu1 }
 0x394   : > { %v1165_v37 = vpop.f32.mrb[25].mxu1  ;;  %v1174_v39 = vadd.f32 %v1712_v36, %v1408_v17 }
 0x395   : > { %v1713_v38 = vpop.f32.mrb[26].mxu1  ;;  %v1166_v42 = vadd.f32 %v1408_v17, %v1165_v37 }
 0x396   : > { %v1177_v40 = vadd.f32 %v1713_v38, %v1408_v17  ;;  %v1168_v41 = vpop.f32.mrb[27].mxu1 }
 0x397   : > { %v1169_v43 = vadd.f32 %v1408_v17, %v1168_v41 }
 0x398   : > { %v1487_v44 = vpack.c.bf16 %v1177_v40, %v1174_v39 }
 0x399   : > { %v1482_v45 = vpack.c.bf16 %v1169_v43, %v1166_v42 }
 0x39a   : > { %1513 = vst [vmem:[%s2064_s27 + $0x28] sm:$0xff] %v1487_v44  }
 0x39b   : > { %1512 = vst [vmem:[%s2064_s27 + $0x20] sm:$0xff] %v1482_v45   ;;  %v1716_v46 = vpop.f32.mrb[28].mxu1 }
 0x39c   : > { %v1181_v47 = vpop.f32.mrb[29].mxu1  ;;  %v1190_v50 = vadd.f32 %v1716_v46, %v1408_v17 }
 0x39d   : > { %v1717_v49 = vpop.f32.mrb[30].mxu1  ;;  %v1182_v53 = vadd.f32 %v1408_v17, %v1181_v47 }
 0x39e   : > { %v1193_v51 = vadd.f32 %v1717_v49, %v1408_v17  ;;  %v1184_v52 = vpop.f32.mrb[31].mxu1 }
 0x39f   : > { %v1185_v54 = vadd.f32 %v1408_v17, %v1184_v52 }
 0x3a0   : > { %v1497_v55 = vpack.c.bf16 %v1193_v51, %v1190_v50 }
 0x3a1   : > { %v1492_v56 = vpack.c.bf16 %v1185_v54, %v1182_v53 }
 0x3a2   : > { %1515 = vst [vmem:[%s2064_s27 + $0x38] sm:$0xff] %v1497_v55  }
 0x3a3   : > { %1514 = vst [vmem:[%s2064_s27 + $0x30] sm:$0xff] %v1492_v56   ;;  %v1720_v57 = vpop.f32.mrb[32].mxu1 }
 0x3a4   : > { %v1197_v48 = vpop.f32.mrb[33].mxu1  ;;  %v1206_v59 = vadd.f32 %v1720_v57, %v1408_v17 }
 0x3a5   : > { %v1721_v58 = vpop.f32.mrb[34].mxu1  ;;  %v1198_v0 = vadd.f32 %v1408_v17, %v1197_v48 }
 0x3a6   : > { %v1209_v60 = vadd.f32 %v1721_v58, %v1408_v17  ;;  %v1200_v61 = vpop.f32.mrb[35].mxu1 }
 0x3a7   : > { %v1201_v1 = vadd.f32 %v1408_v17, %v1200_v61 }
 0x3a8   : > { %v1507_v2 = vpack.c.bf16 %v1209_v60, %v1206_v59 }
 0x3a9   : > { %v1502_v3 = vpack.c.bf16 %v1201_v1, %v1198_v0 }
 0x3aa   : > { %1517 = vst [vmem:[%s2064_s27 + $0x48] sm:$0xff] %v1507_v2  }
 0x3ab   : > { %1516 = vst [vmem:[%s2064_s27 + $0x40] sm:$0xff] %v1502_v3  }
 0x3ac PF: > { %s19_s30 = sadd.s32 1, %s1780_s30  }
 0x3ad   : > { %p16_p5 = scmp.ge.s32.totalorder %s19_s30, 4  }
 0x3af   :  { %18 = sbr.rel (!%p16_p5) target bundleno = 1 (0x1), region = 86 }

</bundles_post_ra>
